<compile_context>
chip_gen: v7x
topology: tpu7x:2x2x1
jax: 0.10.0
libtpu: 0.0.40
codegen_flags: <defaults>
</compile_context>

<pallas_src>
import math

import jax
import jax.numpy as jnp
from jax.experimental import pallas as pl
from jax.experimental.pallas import tpu as pltpu


def _copy_kernel(x_ref, o_ref):
    # Streaming copy of one (block_rows, lanes) tile of the flattened buffer.
    o_ref[...] = x_ref[...]


def _round_up(a, b):
    return (a + b - 1) // b * b


def _gen_params():
    """(target_block_bytes, vmem_limit_bytes) tuned per TPU generation."""
    try:
        kind = jax.devices()[0].device_kind.lower()
    except Exception:
        kind = ""
    if "v5" in kind:
        # 4 buffers x 2 MiB = 8 MiB: comfortably under the 16 MiB scoped default.
        return 2 << 20, None
    if "v6" in kind:
        # 4 buffers x 8 MiB = 32 MiB scoped; physical VMEM is 128 MiB.
        return 8 << 20, 64 << 20
    # v7x (64 MiB physical VMEM) / unknown: 4 buffers x 6 MiB = 24 MiB.
    return 6 << 20, 40 << 20


def _materialized_flatten(x):
    """Materializing copy of the flattened view: fresh (n, d) buffer."""
    n = x.shape[0]
    d = math.prod(x.shape[1:]) if x.ndim > 1 else 1
    total = n * d
    itemsize = jnp.dtype(x.dtype).itemsize
    sub = max(8, 32 // max(itemsize, 1))  # 8 f32 / 16 bf16 / 32 int8-fp8

    # Lane-dense view of the flat buffer (no padding: pick a divisor of total).
    lanes = next((c for c in (512, 256, 128) if total % c == 0), None)
    if lanes is None:
        # Ragged total (not a multiple of 128): single full-array block on the
        # natural (n, d) view (block == full array dims, so no (8,128) rule).
        # TODO(synk): very large ragged activations would need a masked tiled
        # path; the notebook's conv-net activations are all 128-multiples.
        return pl.pallas_call(
            _copy_kernel,
            out_shape=jax.ShapeDtypeStruct((n, d), x.dtype),
        )(x.reshape(n, d))

    rows = total // lanes
    x2 = x.reshape(rows, lanes)  # metadata-only view for contiguous x

    target_bytes, vmem_limit = _gen_params()
    target_rows = max(sub, (target_bytes // (lanes * itemsize)) // sub * sub)
    # Cap block_rows so large tensors keep >= ~8 grid steps (v7x dual-TC
    # load balance across the "parallel" axis).
    balance_rows = _round_up(max(1, -(-rows // 8)), sub)
    block_rows = min(target_rows, balance_rows)
    if block_rows >= rows:
        block_rows = rows            # single block == full dim (always legal)
    grid = (pl.cdiv(rows, block_rows),)  # ragged tail -> Pallas block masking

    cp_kwargs = dict(dimension_semantics=("parallel",))
    if vmem_limit is not None:
        cp_kwargs["vmem_limit_bytes"] = vmem_limit

    out2 = pl.pallas_call(
        _copy_kernel,
        out_shape=jax.ShapeDtypeStruct((rows, lanes), x.dtype),
        grid_spec=pltpu.PrefetchScalarGridSpec(
            num_scalar_prefetch=0,
            grid=grid,
            in_specs=[pl.BlockSpec((block_rows, lanes), lambda i: (i, 0))],
            out_specs=pl.BlockSpec((block_rows, lanes), lambda i: (i, 0)),
        ),
        compiler_params=pltpu.CompilerParams(**cp_kwargs),
    )(x2)

    return out2.reshape(n, d)


def lambda_flatten(x, *, materialize=False):
    """Pallas equivalent of Lambda(flatten): x.view(x.shape[0], -1).

    flatten is metadata-only, so the default is a free jnp.reshape with no
    kernel launch.  Pass materialize=True to force a fresh, contiguous output
    buffer via a Pallas streaming-copy kernel.
    """
    if not materialize:
        return jnp.reshape(x, (x.shape[0], -1))
    return _materialized_flatten(x)


if __name__ == "__main__":
    key = jax.random.PRNGKey(0)
    k0, k1 = jax.random.split(key)

    # Small NCHW input consistent with the notebook's conv-net usage.
    x = jax.random.normal(k0, (2, 4, 16, 16), dtype=jnp.float32)
    ref = x.reshape(x.shape[0], -1)

    # Default (free) path: metadata-only reshape, no kernel launch.
    out_fast = jax.block_until_ready(lambda_flatten(x))
    assert out_fast.shape == ref.shape and out_fast.dtype == x.dtype
    assert jnp.array_equal(out_fast, ref), "fast-path mismatch"

    # Kernel path: materialized flatten copy.
    out = jax.block_until_ready(lambda_flatten(x, materialize=True))
    assert out.shape == (2, 4 * 16 * 16), out.shape
    assert out.dtype == x.dtype
    assert jnp.array_equal(out, ref), "mismatch vs reference flatten"

    # Larger bf16 case exercises the multi-block grid + dtype-aware sublanes.
    y = jax.random.normal(k1, (16, 8, 32, 32), dtype=jnp.bfloat16)
    out_y = jax.block_until_ready(lambda_flatten(y, materialize=True))
    assert jnp.array_equal(out_y, y.reshape(16, -1)), "bf16 mismatch"

    print("KERNEL_OK")
</pallas_src>

<mosaic_0001>
module attributes {stable_mosaic.version = 11 : i64} {
  func.func @_copy_kernel(%arg0: i32, %arg1: memref<4x512xf32, #tpu.memory_space<vmem>>, %arg2: memref<4x512xf32, #tpu.memory_space<vmem>>) attributes {dimension_semantics = [#tpu.dimension_semantics<parallel>], iteration_bounds = array<i64: 1>, scalar_prefetch = 0 : i64, scratch_operands = 0 : i64, tpu.core_type = #tpu.core_type<tc>, window_params = [{transform_indices = @transform_0, window_bounds = array<i64: 4, 512>}, {transform_indices = @transform_1, window_bounds = array<i64: 4, 512>}]} {
    %c0 = arith.constant 0 : index
    %c0_0 = arith.constant 0 : index
    %0 = vector.load %arg1[%c0, %c0_0] : memref<4x512xf32, #tpu.memory_space<vmem>>, vector<4x512xf32>
    %c0_1 = arith.constant 0 : index
    %c0_2 = arith.constant 0 : index
    %1 = vector.load %arg2[%c0_1, %c0_2] : memref<4x512xf32, #tpu.memory_space<vmem>>, vector<4x512xf32>
    tpu.vector_store %arg2[%c0_1, %c0_2], %0 {strides = array<i32>} : memref<4x512xf32, #tpu.memory_space<vmem>>, vector<4x512xf32>,
    return
  }
  func.func @transform_0(%arg0: i32) -> (i32, i32) {
    %c0_i32 = arith.constant 0 : i32
    %c0_i32_0 = arith.constant 0 : i32
    return %arg0, %c0_i32 : i32, i32
  }
  func.func @transform_1(%arg0: i32) -> (i32, i32) {
    %c0_i32 = arith.constant 0 : i32
    %c0_i32_0 = arith.constant 0 : i32
    return %arg0, %c0_i32 : i32, i32
  }
}

</mosaic_0001>

<bundles_post_ra>
// kernel: tpu_custom_call.1
= control target key start
LH: loop header
LB: loop body
LE: loop exit
PB: predicated region body
PF: predicated region fallthrough
CT: control target
= control target key end

     0   :  { %6 = vsyncpa [#allocation3], 0  ;;  %s126_s0 = inlined_call_operand.hbm [shape: f32[4,512], index: 0, kind: input, shape index: {}]   ;;  %s127_s1 = inlined_call_operand.hbm [shape: f32[4,512], index: 1, kind: output, shape index: {}]  }
   0x1   :  { %7 = vsyncpa [#allocation4], 0  ;;  %s90_s6 = smov [#allocation2]   ;;  %s42_s10 = scalar_lea.hbm %s126_s0, 256 }
   0x2   :  { %s14_s7 = sshll.u32 %s90_s6, 4  ;;  %p43_p0 = scmp.ne.s32.totalorder %s126_s0, %s42_s10  ;;  %s15_s7 = int_to_ptr.vmem [resolvable:$true] %s14_s7 }
   0x3   :  { %p46_p1 = scmp.lt.u32.totalorder %s42_s10, %s126_s0 }
   0x5   :  { %p48_p2 = pnand %p46_p1, %p43_p0 }
   0x7   :  { %51 = shalt.err (!%p48_p2)
}
   0x8   :  { %s52_s15 = scalar_lea.vmem %s15_s7, 256  ;;  %p57_p4 = scmp.lt.s32.totalorder %s15_s7, %s15_s7 }
   0x9   :  { %p53_p3 = scmp.ne.s32.totalorder %s15_s7, %s52_s15  ;;  %p58_p5 = scmp.lt.s32.totalorder %s52_s15, %s52_s15 }
   0xb   :  { %p59_p6 = por %p58_p5, %p57_p4 }
   0xd   :  { %p60_p7 = pnand %p59_p6, %p53_p3 }
   0xf   :  { %63 = shalt.err (!%p60_p7)
}
  0x10   :  { %17 = dma.hbm_to_vmem [thread:$0]  %s126_s0, 256, %s15_s7, [#allocation3]  }
  0x11   :  { %86 = dma.done.wait [#allocation3], 256  }
  0x12   :  { %87 = vsyncadd [#allocation3], 4294967040  ;;  %s91_s18 = smov [#allocation5]   ;;  %v21_v0 = vld [vmem:[#allocation2] sm:$0xff]  ;;  %v22_v1 = vld [vmem:[#allocation2 + $0x8] sm:$0xff] }
  0x13   :  { %s31_s19 = sshll.u32 %s91_s18, 4  ;;  %23 = vst [vmem:[#allocation5] sm:$0xff] %v21_v0  ;;  %24 = vst [vmem:[#allocation5 + $0x8] sm:$0xff] %v22_v1  ;;  %s32_s19 = int_to_ptr.vmem [resolvable:$true] %s31_s19 }
  0x14   :  { %s64_s20 = scalar_lea.vmem %s32_s19, 256  ;;  %p69_p9 = scmp.lt.s32.totalorder %s32_s19, %s32_s19 }
  0x15   :  { %p65_p8 = scmp.ne.s32.totalorder %s32_s19, %s64_s20  ;;  %p70_p10 = scmp.lt.s32.totalorder %s64_s20, %s64_s20 }
  0x17   :  { %p71_p11 = por %p70_p10, %p69_p9 }
  0x19   :  { %p72_p12 = pnand %p71_p11, %p65_p8 }
  0x1b   :  { %75 = shalt.err (!%p72_p12)
}
  0x1c   :  { %s76_s0 = scalar_lea.hbm %s127_s1, 256 }
  0x1d   :  { %p77_p13 = scmp.ne.s32.totalorder %s127_s1, %s76_s0  ;;  %p80_p0 = scmp.lt.u32.totalorder %s76_s0, %s127_s1 }
  0x1f   :  { %p82_p1 = pnand %p80_p0, %p77_p13 }
  0x21   :  { %85 = shalt.err (!%p82_p1)
}
  0x22   :  { %34 = dma.vmem_to_hbm [thread:$0]  %s32_s19, 256, %s127_s1, [#allocation4]  }
  0x23   :  { %88 = dma.done.wait [#allocation4], 256  }
  0x24   :  { %89 = vsyncadd [#allocation4], 4294967040 }
  0x25   :  { %38 = vsyncpa [#allocation3], 1 }
  0x26   :  { %39 = vsyncpa [#allocation4], 1 }

</bundles_post_ra>
